<compile_context>
chip_gen: v7x
topology: tpu7x:2x2x1
jax: 0.10.0
libtpu: 0.0.40
codegen_flags: <defaults>
</compile_context>

<pallas_src>
import jax
import jax.numpy as jnp
from jax import lax
from jax.experimental import pallas as pl
from jax.experimental.pallas import tpu as pltpu


def _backbone_update_kernel(s_ref, w_ref, bias_ref, tr_ref, tt_ref):
    # s_ref:    (1, c_s, TN)  current (batch, N-tile) slice, lane-dense over N
    # w_ref:    (6, c_s)      Conv1d(kernel_size=1) weight (kernel dim squeezed)
    # bias_ref: (6, 1)        Conv1d bias
    # tr_ref:   (1, 9, TN)    flattened 3x3 rotation, row-major k = i*3 + j
    # tt_ref:   (1, 3, TN)    translation
    s = s_ref[0]                      # (c_s, TN)
    w = w_ref[...]                    # (6, c_s)
    bias = bias_ref[...]              # (6, 1)

    # 1x1 conv over channels == (6, c_s) @ (c_s, TN) matmul on the MXU.
    out = jnp.dot(w, s, preferred_element_type=jnp.float32) + bias   # (6, TN)

    bq = out[0:1, :]
    cq = out[1:2, :]
    dq = out[2:3, :]

    # Normalized quaternion; the scalar component is the implicit 1.
    # rsqrt lowers to the EUP (its own VLIW slot) instead of sqrt + VPU divide.
    a = lax.rsqrt(1.0 + bq * bq + cq * cq + dq * dq)
    b = bq * a
    c = cq * a
    d = dq * a

    aa, bb, cc, dd = a * a, b * b, c * c, d * d
    ab, ac, ad = a * b, a * c, a * d
    bc, bd, cd = b * c, b * d, c * d

    # Doubled cross terms, built once and reused for all off-diagonal entries.
    ab2 = ab + ab
    ac2 = ac + ac
    ad2 = ad + ad
    bc2 = bc + bc
    bd2 = bd + bd
    cd2 = cd + cd

    # Shared diagonal pieces.
    s_ab = aa + bb
    s_cd = cc + dd
    d_ab = aa - bb
    d_cd = cc - dd

    # Nine direct single-sublane stores: no cross-sublane concatenate/relayout
    # and no extra (9, TN) temporary.
    tr_ref[0, 0:1, :] = s_ab - s_cd      # r00 = aa + bb - cc - dd
    tr_ref[0, 1:2, :] = bc2 - ad2        # r01
    tr_ref[0, 2:3, :] = bd2 + ac2        # r02
    tr_ref[0, 3:4, :] = bc2 + ad2        # r10
    tr_ref[0, 4:5, :] = d_ab + d_cd      # r11 = aa - bb + cc - dd
    tr_ref[0, 5:6, :] = cd2 - ab2        # r12
    tr_ref[0, 6:7, :] = bd2 - ac2        # r20
    tr_ref[0, 7:8, :] = cd2 + ab2        # r21
    tr_ref[0, 8:9, :] = d_ab - d_cd      # r22 = aa - bb - cc + dd

    # Translation: rows 3..5 of the conv output, stored as one contiguous slab.
    tt_ref[0] = out[3:6, :]


def backbone_update(s, weight, bias, *, tile_n=512, return_lane_dense=False):
    """s: (B, c_s, N) f32; weight: (6, c_s); bias: (6,).

    Returns (t_r (B, N, 3, 3), t_t (B, N, 3)) by default, or the lane-dense
    (t_r9 (B, 9, N), t_t3 (B, 3, N)) pair if return_lane_dense=True (cheaper:
    skips the post-kernel relayout, which is an extra HBM round trip on a
    memory-bound op).
    """
    B, c_s, N = s.shape
    s = s.astype(jnp.float32)
    weight = weight.astype(jnp.float32)
    bias2d = bias.reshape(6, 1).astype(jnp.float32)

    # Choose the N-tile: full N when small (block == full dim is always legal),
    # otherwise a lane-aligned tile (multiple of 128) and pad N up to it.
    if N <= tile_n:
        tn = N
        n_pad = N
    else:
        tn = tile_n
        n_pad = ((N + tn - 1) // tn) * tn
    s_p = s if n_pad == N else jnp.pad(s, ((0, 0), (0, 0), (0, n_pad - N)))

    grid = (B, n_pad // tn)

    tr9, tt3 = pl.pallas_call(
        _backbone_update_kernel,
        out_shape=(
            jax.ShapeDtypeStruct((B, 9, n_pad), jnp.float32),
            jax.ShapeDtypeStruct((B, 3, n_pad), jnp.float32),
        ),
        grid_spec=pltpu.PrefetchScalarGridSpec(
            num_scalar_prefetch=0,
            grid=grid,
            in_specs=[
                pl.BlockSpec((1, c_s, tn), lambda b, n: (b, 0, n)),
                pl.BlockSpec((6, c_s), lambda b, n: (0, 0)),
                pl.BlockSpec((6, 1), lambda b, n: (0, 0)),
            ],
            out_specs=[
                pl.BlockSpec((1, 9, tn), lambda b, n: (b, 0, n)),
                pl.BlockSpec((1, 3, tn), lambda b, n: (b, 0, n)),
            ],
        ),
        compiler_params=pltpu.CompilerParams(
            # Both axes are independent -> shardable across the 2 TCs on v7x.
            dimension_semantics=("parallel", "parallel")),
    )(s_p, weight, bias2d)

    if n_pad != N:
        tr9 = tr9[:, :, :N]
        tt3 = tt3[:, :, :N]

    if return_lane_dense:
        return tr9, tt3

    # Glue: reorder to the PyTorch return layout (separate XLA pass; prefer
    # return_lane_dense=True if the consumer tolerates (B, 9, N)/(B, 3, N)).
    t_r = jnp.transpose(tr9.reshape(B, 3, 3, N), (0, 3, 1, 2))   # (B, N, 3, 3)
    t_t = jnp.transpose(tt3, (0, 2, 1))                          # (B, N, 3)
    return t_r, t_t


def _reference(s, weight, bias):
    # pure-JAX reference of the PyTorch forward
    out = jnp.einsum("oc,bcn->bon", weight, s) + bias[None, :, None]   # (B,6,N)
    bq, cq, dq = out[:, 0, :], out[:, 1, :], out[:, 2, :]
    t_t = jnp.transpose(out[:, 3:, :], (0, 2, 1))
    denom = jnp.sqrt(1.0 + bq**2 + cq**2 + dq**2)
    a = 1.0 / denom
    b = bq / denom
    c = cq / denom
    d = dq / denom
    rows = jnp.stack([
        jnp.stack([a**2 + b**2 - c**2 - d**2, 2*b*c - 2*a*d, 2*b*d + 2*a*c], axis=1),
        jnp.stack([2*b*c + 2*a*d, a**2 - b**2 + c**2 - d**2, 2*c*d - 2*a*b], axis=1),
        jnp.stack([2*b*d - 2*a*c, 2*c*d + 2*a*b, a**2 - b**2 - c**2 + d**2], axis=1),
    ], axis=1)                                   # (B, 3, 3, N)
    t_r = jnp.transpose(rows, (0, 3, 1, 2))      # (B, N, 3, 3)
    return t_r, t_t


if __name__ == "__main__":
    key = jax.random.PRNGKey(0)
    k_s, k_w, k_b, k_s2 = jax.random.split(key, 4)

    # Small primary test (single N-tile path).
    B, c_s, N = 2, 32, 16
    s = jax.random.normal(k_s, (B, c_s, N), dtype=jnp.float32)
    bound = 1.0 / (c_s ** 0.5)
    weight = jax.random.uniform(k_w, (6, c_s), jnp.float32, -bound, bound)
    bias = jax.random.uniform(k_b, (6,), jnp.float32, -bound, bound)

    t_r, t_t = jax.block_until_ready(backbone_update(s, weight, bias))
    t_r_ref, t_t_ref = _reference(s, weight, bias)
    assert t_r.shape == (B, N, 3, 3) and t_t.shape == (B, N, 3)
    assert jnp.allclose(t_r, t_r_ref, atol=1e-5, rtol=1e-5)
    assert jnp.allclose(t_t, t_t_ref, atol=1e-5, rtol=1e-5)

    # Secondary test exercising the N-tiled grid + padding path.
    B2, N2, TN2 = 1, 300, 128
    s2 = jax.random.normal(k_s2, (B2, c_s, N2), dtype=jnp.float32)
    t_r2, t_t2 = jax.block_until_ready(
        backbone_update(s2, weight, bias, tile_n=TN2))
    t_r2_ref, t_t2_ref = _reference(s2, weight, bias)
    assert t_r2.shape == (B2, N2, 3, 3) and t_t2.shape == (B2, N2, 3)
    assert jnp.allclose(t_r2, t_r2_ref, atol=1e-5, rtol=1e-5)
    assert jnp.allclose(t_t2, t_t2_ref, atol=1e-5, rtol=1e-5)

    # Lane-dense fast path (no post-kernel relayout).
    tr9, tt3 = jax.block_until_ready(
        backbone_update(s, weight, bias, return_lane_dense=True))
    assert tr9.shape == (B, 9, N) and tt3.shape == (B, 3, N)
    assert jnp.allclose(jnp.transpose(tr9.reshape(B, 3, 3, N), (0, 3, 1, 2)),
                        t_r_ref, atol=1e-5, rtol=1e-5)
    assert jnp.allclose(jnp.transpose(tt3, (0, 2, 1)), t_t_ref, atol=1e-5, rtol=1e-5)

    print("KERNEL_OK")
</pallas_src>

<mosaic_0001>
module attributes {stable_mosaic.version = 11 : i64} {
  func.func @_backbone_update_kernel(%arg0: i32, %arg1: i32, %arg2: memref<1x32x16xf32, #tpu.memory_space<vmem>>, %arg3: memref<6x32xf32, #tpu.memory_space<vmem>>, %arg4: memref<6x1xf32, #tpu.memory_space<vmem>>, %arg5: memref<1x9x16xf32, #tpu.memory_space<vmem>>, %arg6: memref<1x3x16xf32, #tpu.memory_space<vmem>>) attributes {dimension_semantics = [#tpu.dimension_semantics<parallel>, #tpu.dimension_semantics<parallel>], iteration_bounds = array<i64: 2, 1>, scalar_prefetch = 0 : i64, scratch_operands = 0 : i64, tpu.core_type = #tpu.core_type<tc>, window_params = [{transform_indices = @transform_0, window_bounds = array<i64: 1, 32, 16>}, {pipeline_mode = #tpu.pipeline_mode<synchronous>, transform_indices = @transform_1, window_bounds = array<i64: 6, 32>}, {pipeline_mode = #tpu.pipeline_mode<synchronous>, transform_indices = @transform_2, window_bounds = array<i64: 6, 1>}, {transform_indices = @transform_3, window_bounds = array<i64: 1, 9, 16>}, {transform_indices = @transform_4, window_bounds = array<i64: 1, 3, 16>}]} {
    %c0 = arith.constant 0 : index
    %c0_0 = arith.constant 0 : index
    %c0_1 = arith.constant 0 : index
    %0 = vector.load %arg2[%c0, %c0_0, %c0_1] : memref<1x32x16xf32, #tpu.memory_space<vmem>>, vector<1x32x16xf32>
    %1 = vector.shape_cast %0 : vector<1x32x16xf32> to vector<32x16xf32>
    %c0_2 = arith.constant 0 : index
    %c0_3 = arith.constant 0 : index
    %2 = vector.load %arg3[%c0_2, %c0_3] : memref<6x32xf32, #tpu.memory_space<vmem>>, vector<6x32xf32>
    %c0_4 = arith.constant 0 : index
    %c0_5 = arith.constant 0 : index
    %3 = vector.load %arg4[%c0_4, %c0_5] : memref<6x1xf32, #tpu.memory_space<vmem>>, vector<6x1xf32>
    %cst = arith.constant dense<0.000000e+00> : vector<6x16xf32>
    %4 = tpu.matmul %2, %1, %cst {dimension_numbers = #tpu.dot_dimension_numbers<[1], [0], [0], [1], [0, 0, 1, 1], [], []>} : vector<6x32xf32>, vector<32x16xf32>, vector<6x16xf32> -> vector<6x16xf32>
    %5 = vector.broadcast %3 : vector<6x1xf32> to vector<6x16xf32>
    %6 = arith.addf %4, %5 : vector<6x16xf32>
    %7 = vector.extract_strided_slice %6 {offsets = [0, 0], sizes = [1, 16], strides = [1, 1]} : vector<6x16xf32> to vector<1x16xf32>
    %8 = vector.extract_strided_slice %6 {offsets = [1, 0], sizes = [1, 16], strides = [1, 1]} : vector<6x16xf32> to vector<1x16xf32>
    %9 = vector.extract_strided_slice %6 {offsets = [2, 0], sizes = [1, 16], strides = [1, 1]} : vector<6x16xf32> to vector<1x16xf32>
    %10 = arith.mulf %7, %7 : vector<1x16xf32>
    %cst_6 = arith.constant 1.000000e+00 : f32
    %11 = vector.broadcast %cst_6 : f32 to vector<1x16xf32>
    %12 = arith.addf %11, %10 : vector<1x16xf32>
    %13 = arith.mulf %8, %8 : vector<1x16xf32>
    %14 = arith.addf %12, %13 : vector<1x16xf32>
    %15 = arith.mulf %9, %9 : vector<1x16xf32>
    %16 = arith.addf %14, %15 : vector<1x16xf32>
    %17 = math.rsqrt %16 : vector<1x16xf32>
    %18 = arith.mulf %7, %17 : vector<1x16xf32>
    %19 = arith.mulf %8, %17 : vector<1x16xf32>
    %20 = arith.mulf %9, %17 : vector<1x16xf32>
    %21 = arith.mulf %17, %17 : vector<1x16xf32>
    %22 = arith.mulf %18, %18 : vector<1x16xf32>
    %23 = arith.mulf %19, %19 : vector<1x16xf32>
    %24 = arith.mulf %20, %20 : vector<1x16xf32>
    %25 = arith.mulf %17, %18 : vector<1x16xf32>
    %26 = arith.mulf %17, %19 : vector<1x16xf32>
    %27 = arith.mulf %17, %20 : vector<1x16xf32>
    %28 = arith.mulf %18, %19 : vector<1x16xf32>
    %29 = arith.mulf %18, %20 : vector<1x16xf32>
    %30 = arith.mulf %19, %20 : vector<1x16xf32>
    %31 = arith.addf %25, %25 : vector<1x16xf32>
    %32 = arith.addf %26, %26 : vector<1x16xf32>
    %33 = arith.addf %27, %27 : vector<1x16xf32>
    %34 = arith.addf %28, %28 : vector<1x16xf32>
    %35 = arith.addf %29, %29 : vector<1x16xf32>
    %36 = arith.addf %30, %30 : vector<1x16xf32>
    %37 = arith.addf %21, %22 : vector<1x16xf32>
    %38 = arith.addf %23, %24 : vector<1x16xf32>
    %39 = arith.subf %21, %22 : vector<1x16xf32>
    %40 = arith.subf %23, %24 : vector<1x16xf32>
    %41 = arith.subf %37, %38 : vector<1x16xf32>
    %c0_7 = arith.constant 0 : index
    %c0_8 = arith.constant 0 : index
    %c0_9 = arith.constant 0 : index
    %42 = vector.load %arg5[%c0_7, %c0_8, %c0_9] : memref<1x9x16xf32, #tpu.memory_space<vmem>>, vector<1x1x16xf32>
    %43 = vector.shape_cast %42 : vector<1x1x16xf32> to vector<1x16xf32>
    %44 = vector.shape_cast %41 : vector<1x16xf32> to vector<1x1x16xf32>
    tpu.vector_store %arg5[%c0_7, %c0_8, %c0_9], %44 {strides = array<i32>} : memref<1x9x16xf32, #tpu.memory_space<vmem>>, vector<1x1x16xf32>,
    %45 = arith.subf %34, %33 : vector<1x16xf32>
    %c0_10 = arith.constant 0 : index
    %c1 = arith.constant 1 : index
    %c0_11 = arith.constant 0 : index
    %46 = vector.load %arg5[%c0_10, %c1, %c0_11] : memref<1x9x16xf32, #tpu.memory_space<vmem>>, vector<1x1x16xf32>
    %47 = vector.shape_cast %46 : vector<1x1x16xf32> to vector<1x16xf32>
    %48 = vector.shape_cast %45 : vector<1x16xf32> to vector<1x1x16xf32>
    tpu.vector_store %arg5[%c0_10, %c1, %c0_11], %48 {strides = array<i32>} : memref<1x9x16xf32, #tpu.memory_space<vmem>>, vector<1x1x16xf32>,
    %49 = arith.addf %35, %32 : vector<1x16xf32>
    %c0_12 = arith.constant 0 : index
    %c2 = arith.constant 2 : index
    %c0_13 = arith.constant 0 : index
    %50 = vector.load %arg5[%c0_12, %c2, %c0_13] : memref<1x9x16xf32, #tpu.memory_space<vmem>>, vector<1x1x16xf32>
    %51 = vector.shape_cast %50 : vector<1x1x16xf32> to vector<1x16xf32>
    %52 = vector.shape_cast %49 : vector<1x16xf32> to vector<1x1x16xf32>
    tpu.vector_store %arg5[%c0_12, %c2, %c0_13], %52 {strides = array<i32>} : memref<1x9x16xf32, #tpu.memory_space<vmem>>, vector<1x1x16xf32>,
    %53 = arith.addf %34, %33 : vector<1x16xf32>
    %c0_14 = arith.constant 0 : index
    %c3 = arith.constant 3 : index
    %c0_15 = arith.constant 0 : index
    %54 = vector.load %arg5[%c0_14, %c3, %c0_15] : memref<1x9x16xf32, #tpu.memory_space<vmem>>, vector<1x1x16xf32>
    %55 = vector.shape_cast %54 : vector<1x1x16xf32> to vector<1x16xf32>
    %56 = vector.shape_cast %53 : vector<1x16xf32> to vector<1x1x16xf32>
    tpu.vector_store %arg5[%c0_14, %c3, %c0_15], %56 {strides = array<i32>} : memref<1x9x16xf32, #tpu.memory_space<vmem>>, vector<1x1x16xf32>,
    %57 = arith.addf %39, %40 : vector<1x16xf32>
    %c0_16 = arith.constant 0 : index
    %c4 = arith.constant 4 : index
    %c0_17 = arith.constant 0 : index
    %58 = vector.load %arg5[%c0_16, %c4, %c0_17] : memref<1x9x16xf32, #tpu.memory_space<vmem>>, vector<1x1x16xf32>
    %59 = vector.shape_cast %58 : vector<1x1x16xf32> to vector<1x16xf32>
    %60 = vector.shape_cast %57 : vector<1x16xf32> to vector<1x1x16xf32>
    tpu.vector_store %arg5[%c0_16, %c4, %c0_17], %60 {strides = array<i32>} : memref<1x9x16xf32, #tpu.memory_space<vmem>>, vector<1x1x16xf32>,
    %61 = arith.subf %36, %31 : vector<1x16xf32>
    %c0_18 = arith.constant 0 : index
    %c5 = arith.constant 5 : index
    %c0_19 = arith.constant 0 : index
    %62 = vector.load %arg5[%c0_18, %c5, %c0_19] : memref<1x9x16xf32, #tpu.memory_space<vmem>>, vector<1x1x16xf32>
    %63 = vector.shape_cast %62 : vector<1x1x16xf32> to vector<1x16xf32>
    %64 = vector.shape_cast %61 : vector<1x16xf32> to vector<1x1x16xf32>
    tpu.vector_store %arg5[%c0_18, %c5, %c0_19], %64 {strides = array<i32>} : memref<1x9x16xf32, #tpu.memory_space<vmem>>, vector<1x1x16xf32>,
    %65 = arith.subf %35, %32 : vector<1x16xf32>
    %c0_20 = arith.constant 0 : index
    %c6 = arith.constant 6 : index
    %c0_21 = arith.constant 0 : index
    %66 = vector.load %arg5[%c0_20, %c6, %c0_21] : memref<1x9x16xf32, #tpu.memory_space<vmem>>, vector<1x1x16xf32>
    %67 = vector.shape_cast %66 : vector<1x1x16xf32> to vector<1x16xf32>
    %68 = vector.shape_cast %65 : vector<1x16xf32> to vector<1x1x16xf32>
    tpu.vector_store %arg5[%c0_20, %c6, %c0_21], %68 {strides = array<i32>} : memref<1x9x16xf32, #tpu.memory_space<vmem>>, vector<1x1x16xf32>,
    %69 = arith.addf %36, %31 : vector<1x16xf32>
    %c0_22 = arith.constant 0 : index
    %c7 = arith.constant 7 : index
    %c0_23 = arith.constant 0 : index
    %70 = vector.load %arg5[%c0_22, %c7, %c0_23] : memref<1x9x16xf32, #tpu.memory_space<vmem>>, vector<1x1x16xf32>
    %71 = vector.shape_cast %70 : vector<1x1x16xf32> to vector<1x16xf32>
    %72 = vector.shape_cast %69 : vector<1x16xf32> to vector<1x1x16xf32>
    tpu.vector_store %arg5[%c0_22, %c7, %c0_23], %72 {strides = array<i32>} : memref<1x9x16xf32, #tpu.memory_space<vmem>>, vector<1x1x16xf32>,
    %73 = arith.subf %39, %40 : vector<1x16xf32>
    %c0_24 = arith.constant 0 : index
    %c8 = arith.constant 8 : index
    %c0_25 = arith.constant 0 : index
    %74 = vector.load %arg5[%c0_24, %c8, %c0_25] : memref<1x9x16xf32, #tpu.memory_space<vmem>>, vector<1x1x16xf32>
    %75 = vector.shape_cast %74 : vector<1x1x16xf32> to vector<1x16xf32>
    %76 = vector.shape_cast %73 : vector<1x16xf32> to vector<1x1x16xf32>
    tpu.vector_store %arg5[%c0_24, %c8, %c0_25], %76 {strides = array<i32>} : memref<1x9x16xf32, #tpu.memory_space<vmem>>, vector<1x1x16xf32>,
    %77 = vector.extract_strided_slice %6 {offsets = [3, 0], sizes = [3, 16], strides = [1, 1]} : vector<6x16xf32> to vector<3x16xf32>
    %c0_26 = arith.constant 0 : index
    %c0_27 = arith.constant 0 : index
    %c0_28 = arith.constant 0 : index
    %78 = vector.load %arg6[%c0_26, %c0_27, %c0_28] : memref<1x3x16xf32, #tpu.memory_space<vmem>>, vector<1x3x16xf32>
    %79 = vector.shape_cast %78 : vector<1x3x16xf32> to vector<3x16xf32>
    %80 = vector.shape_cast %77 : vector<3x16xf32> to vector<1x3x16xf32>
    tpu.vector_store %arg6[%c0_26, %c0_27, %c0_28], %80 {strides = array<i32>} : memref<1x3x16xf32, #tpu.memory_space<vmem>>, vector<1x3x16xf32>,
    return
  }
  func.func @transform_0(%arg0: i32, %arg1: i32) -> (i32, i32, i32) {
    %c0_i32 = arith.constant 0 : i32
    %c0_i32_0 = arith.constant 0 : i32
    return %arg0, %c0_i32, %arg1 : i32, i32, i32
  }
  func.func @transform_1(%arg0: i32, %arg1: i32) -> (i32, i32) {
    %c0_i32 = arith.constant 0 : i32
    %c0_i32_0 = arith.constant 0 : i32
    %c0_i32_1 = arith.constant 0 : i32
    return %c0_i32, %c0_i32_0 : i32, i32
  }
  func.func @transform_2(%arg0: i32, %arg1: i32) -> (i32, i32) {
    %c0_i32 = arith.constant 0 : i32
    %c0_i32_0 = arith.constant 0 : i32
    %c0_i32_1 = arith.constant 0 : i32
    return %c0_i32, %c0_i32_0 : i32, i32
  }
  func.func @transform_3(%arg0: i32, %arg1: i32) -> (i32, i32, i32) {
    %c0_i32 = arith.constant 0 : i32
    %c0_i32_0 = arith.constant 0 : i32
    return %arg0, %c0_i32, %arg1 : i32, i32, i32
  }
  func.func @transform_4(%arg0: i32, %arg1: i32) -> (i32, i32, i32) {
    %c0_i32 = arith.constant 0 : i32
    %c0_i32_0 = arith.constant 0 : i32
    return %arg0, %c0_i32, %arg1 : i32, i32, i32
  }
}

</mosaic_0001>

<bundles_post_ra>
// kernel: tpu_custom_call.1
= control target key start
LH: loop header
LB: loop body
LE: loop exit
PB: predicated region body
PF: predicated region fallthrough
CT: control target
= control target key end

     0   :  { %s658_s15 = smov 0   ;;  %s660_s16 = smov 0   ;;  %s714_s0 = inlined_call_operand.vmem [shape: f32[2,32,16], index: 0, kind: input, shape index: {}]   ;;  %s715_s1 = inlined_call_operand.vmem [shape: f32[6,32], index: 1, kind: input, shape index: {}]   ;;  %s716_s2 = inlined_call_operand.vmem [shape: f32[6,1], index: 2, kind: input, shape index: {}]   ;;  %s717_s3 = inlined_call_operand.vmem [shape: f32[2,9,16], index: 3, kind: output, shape index: {0}]   ;;  %s718_s4 = inlined_call_operand.vmem [shape: f32[2,3,16], index: 4, kind: output, shape index: {1}]  }
   0x1   :  { %s662_s17 = smov 0  }
   0x2 LB: > { %s27_s18 = sadd.s32 1, %s623_s16  ;;  %p541_p0 = scmp.ge.s32.totalorder %s627_s17, 1  ;;  %s627_s17 = sphi %s662_s17, %s15_s17   ;;  %s623_s16 = sphi %s660_s16, %s720_s16   ;;  %s619_s15 = sphi %s658_s15, %s719_s15  }
   0x3   : > { %p29_p1 = scmp.ge.s32.totalorder %s27_s18, 2  ;;  %p186_p2 = scmp.lt.s32.totalorder %s627_s17, 3 }
   0x5   : > { %s722_s18 = smov (%p29_p1, %s27_s18), 0  ;;  %p187_p3 = pnand %p541_p0, %p186_p2 }
   0x6   : > { %p225_p4 = scmp.lt.s32.totalorder (!%p187_p3), %s619_s15, 1  ;;  %v629_v0 = vmov (!%p187_p3), 0.0|0.0   ;;  %vm630_vm0 = vmmov (!%p187_p3), 0   ;;  %v631_v1 = vmov (!%p187_p3), 0.0   ;;  %v253_v2 = vld [vmem:[%s716_s2] sm:$0x3f] (!%p187_p3) }
   0x7   : > { %190 = sbr.rel (%p187_p3) target bundleno = 277 (0x115), region = 32  ;;  %568 = vmatprep.subr.bf16.mxu0 (!%p187_p3), %v629_v0  ;;  %565 = vmatprep.mubr.msk.f32.mxu0 (!%p187_p3), %vm630_vm0, %v631_v1  ;;  %v632_v3 = vmov (!%p187_p3), 0   ;;  %v252_v10 = vld [vmem:[%s715_s1] sm:$0x3f] (!%p187_p3)  ;;  %vm259_vm1 = vcmask (!%p187_p3), 261120   ;;  %vm411_vm2 = vcmask (!%p187_p3), 128003  }
   0x8   : > { %602 = vset.pattern.permute.xlu0 (!%p187_p3), %v632_v3  ;;  %vm386_vm3 = vcmask (!%p187_p3), 122880   ;;  %vm403_vm4 = vcmask (!%p187_p3), 123905  }
   0x9   : > { %256 = vperm.xlu0 (!%p187_p3), %602, %v253_v2  }
   0xe   : > { %s724_s15 = smov (!%p225_p4, %s619_s15), 1 }
   0xf   : > { %s550_s21 = sshll.u32 %s724_s15, 5  ;;  %s546_s27 = sshll.u32 %s724_s15, 2 }
  0x10   : > { %s232_s24 = scalar_lea.vmem %s714_s0, %s550_s21  ;;  %s247_s30 = scalar_lea.vmem %s718_s4, %s546_s27 }
  0x11   : > { %v248_v4 = vld [vmem:[%s232_s24] sm:$0xff]  ;;  %v249_v5 = vld [vmem:[%s232_s24 + $0x8] sm:$0xff]  ;;  %v250_v6 = vld [vmem:[%s232_s24 + $0x10] sm:$0xff]  ;;  %s551_s5 = sshll.u32 %s724_s15, 4 }
  0x12   : > { %v569_v7 = vpack.c.bf16 %v249_v5, %v248_v4  ;;  %v251_v8 = vld [vmem:[%s232_s24 + $0x18] sm:$0xff]  ;;  %s240_s8 = scalar_lea.vmem %s717_s3, %s551_s5 }
  0x13   : > { %v572_v9 = vpack.c.bf16 %v251_v8, %v250_v6 }
  0x14   : > { %570 = vmatpush3.bf16.msra.mxu0 %v569_v7 }
  0x15   : > { %571 = vmatprep.subr.bf16.mxu0 %v629_v0 }
  0x18   : > { %573 = vmatpush3.bf16.msra.mxu0 %v572_v9 }
  0x1b   : > { %566 = vmatmul.mubr.msk.f32.vlgmr.msra.gmra.mrb[0].mxu0 %vm259_vm1, %v252_v10 }
  0x88   : > { %v257_v11 = vpop.permute.xlu0 %256 }
  0xee   : > { %v329_v12 = vpop.f32.mrb[0].mxu0 }
  0xef   : > { %v330_v13 = vadd.f32 %v329_v12, %v257_v11  ;;  %v567_v14 = vpop.f32.mrb[1].mxu0 }
  0xf1   : > { %v333_v15 = vmul.f32 %v330_v13, %v330_v13  ;;  %412 = vst.msk [vmem:[%s247_s30 - $0x3] sm:$0x38] %vm411_vm2, %v330_v13 }
  0xf3   : > { %v334_v16 = vadd.f32 1.0, %v333_v15  ;;  %v336_v17 = vrot.slane %v333_v15, 1  ;;  %v339_v19 = vrot.slane %v333_v15, 2 }
  0xf5   : > { %v338_v18 = vadd.f32 %v336_v17, %v334_v16 }
  0xf7   : > { %v341_v20 = vadd.f32 %v339_v19, %v338_v18 }
  0xf9   : > { %603 = vrsqrt.f32 %v341_v20 }
 0x103   : > { %v604_v21 = vpop.eup %603 }
 0x104   : > { %v343_v22 = vmul.f32 %v604_v21, %v330_v13  ;;  %v345_v23 = vrot.slane %v604_v21, 7  ;;  %v348_v24 = vrot.slane %v604_v21, 6  ;;  %v351_v32 = vmul.f32 %v604_v21, %v604_v21 }
 0x106   : > { %v347_v25 = vmul.f32 %v345_v23, %v330_v13  ;;  %v350_v26 = vmul.f32 %v348_v24, %v330_v13  ;;  %v355_v27 = vmul.f32 %v604_v21, %v343_v22  ;;  %v352_v28 = vmul.f32 %v343_v22, %v343_v22 }
 0x108   : > { %v354_v29 = vmul.f32 %v350_v26, %v350_v26  ;;  %v357_v30 = vrot.slane %v347_v25, 1  ;;  %v361_v31 = vrot.slane %v350_v26, 2  ;;  %v353_v33 = vmul.f32 %v347_v25, %v347_v25 }
 0x109   : > { %v366_v34 = vrot.slane %v350_v26, 1  ;;  %v369_v35 = vadd.f32 %v355_v27, %v355_v27  ;;  %v375_v41 = vadd.f32 %v352_v28, %v351_v32  ;;  %v380_v43 = vsub.f32 %v351_v32, %v352_v28 }
 0x10a   : > { %v359_v36 = vmul.f32 %v604_v21, %v357_v30  ;;  %v363_v37 = vmul.f32 %v604_v21, %v361_v31  ;;  %v364_v38 = vmul.f32 %v357_v30, %v343_v22  ;;  %v365_v39 = vmul.f32 %v361_v31, %v343_v22 }
 0x10b   : > { %v368_v40 = vmul.f32 %v366_v34, %v347_v25  ;;  %v377_v42 = vrot.slane %v354_v29, 1  ;;  %v400_v51 = vrot.slane %v369_v35, 7 }
 0x10c   : > { %v370_v44 = vadd.f32 %v359_v36, %v359_v36  ;;  %v371_v45 = vadd.f32 %v363_v37, %v363_v37  ;;  %v372_v46 = vadd.f32 %v364_v38, %v364_v38  ;;  %v373_v47 = vadd.f32 %v365_v39, %v365_v39 }
 0x10d   : > { %v374_v48 = vadd.f32 %v368_v40, %v368_v40  ;;  %v379_v49 = vadd.f32 %v377_v42, %v353_v33  ;;  %v381_v50 = vsub.f32 %v353_v33, %v377_v42 }
 0x10e   : > { %v388_v52 = vsub.f32 %v372_v46, %v371_v45  ;;  %v390_v53 = vadd.f32 %v373_v47, %v370_v44  ;;  %v392_v54 = vadd.f32 %v372_v46, %v371_v45  ;;  %v405_v55 = vsub.f32 %v373_v47, %v370_v44 }
 0x10f   : > { %v383_v56 = vrot.slane %v379_v49, 1  ;;  %v395_v57 = vrot.slane %v381_v50, 1  ;;  %v402_v58 = vsub.f32 %v374_v48, %v400_v51  ;;  %v407_v59 = vadd.f32 %v400_v51, %v374_v48 }
 0x110   : > { %389 = vst.msk [vmem:[%s240_s8 + $0x1] sm:$0x1] %vm386_vm3, %v388_v52  ;;  %391 = vst.msk [vmem:[%s240_s8 + $0x2] sm:$0x1] %vm386_vm3, %v390_v53 }
 0x111   : > { %393 = vst.msk [vmem:[%s240_s8 + $0x3] sm:$0x1] %vm386_vm3, %v392_v54  ;;  %406 = vst.msk [vmem:[%s240_s8 + $0x6] sm:$0x1] %vm386_vm3, %v405_v55  ;;  %v385_v60 = vsub.f32 %v375_v41, %v383_v56  ;;  %v397_v61 = vadd.f32 %v395_v57, %v380_v43  ;;  %v409_v62 = vsub.f32 %v380_v43, %v395_v57 }
 0x112   : > { %404 = vst.msk [vmem:[%s240_s8 + $0x4] sm:$0x2] %vm403_vm4, %v402_v58  ;;  %408 = vst.msk [vmem:[%s240_s8 + $0x6] sm:$0x2] %vm403_vm4, %v407_v59 }
 0x113   : > { %387 = vst.msk [vmem:[%s240_s8] sm:$0x1] %vm386_vm3, %v385_v60  ;;  %398 = vst.msk [vmem:[%s240_s8 + $0x4] sm:$0x1] %vm386_vm3, %v397_v61 }
 0x114   : > { %410 = vst.msk [vmem:[%s240_s8 + $0x8] sm:$0x1] %vm386_vm3, %v409_v62 }
 0x115 PF: > { %s15_s17 = sadd.s32 1, %s627_s17   ;;  %s719_s15 = smov %s623_s16 }
 0x116   : > { %p12_p5 = scmp.ge.s32.totalorder %s15_s17, 4   ;;  %s720_s16 = smov %s722_s18 }
 0x118   :  { %14 = sbr.rel (!%p12_p5) target bundleno = 2 (0x2), region = 74 }

</bundles_post_ra>
